<compile_context>
chip_gen: v7x
topology: tpu7x:2x2x1
jax: 0.10.0
libtpu: 0.0.40
codegen_flags: <defaults>
</compile_context>

<pallas_src>
import jax
import jax.numpy as jnp
from jax.experimental import pallas as pl
from jax.experimental.pallas import tpu as pltpu


def _mlp_kernel(x_ref, w1_ref, b1_ref, w2_ref, b2_ref, out_ref):
    # In-kernel cast: read x once as f32 from HBM, cast on the VPU for free.
    x_bf = x_ref[...].astype(jnp.bfloat16)
    # fc1: (B, D_in)bf16 @ (D_in, 128)bf16 -> f32 accumulate on the MXU.
    h = jnp.dot(x_bf, w1_ref[...], preferred_element_type=jnp.float32)
    # Bias + ReLU in f32 (VPU epilogue; v5e-safe, no bf16 VPU dependence).
    h = jnp.maximum(h + b1_ref[...], 0.0)
    # fc2: (B, 128)bf16 @ (128, D_out)bf16 -> f32 accumulate.
    y = jnp.dot(h.astype(jnp.bfloat16), w2_ref[...],
                preferred_element_type=jnp.float32)
    # Direct (B, D_out) f32 store — no padded slab, no post-kernel slice.
    out_ref[...] = (y + b2_ref[...]).astype(out_ref.dtype)


def prepare_params(w1, b1, w2, b2):
    """One-time weight preparation, hoisted out of the per-call hot path.

    Takes PyTorch nn.Linear storage layout:
      w1: (128, D_in), b1: (128,), w2: (D_out, 128), b2: (D_out,)
    Returns kernel-ready constants:
      w1_bf: (D_in, 128) bf16, b1_2d: (1, 128) f32,
      w2_bf: (128, D_out) bf16, b2_2d: (1, D_out) f32.
    """
    H = w1.shape[0]
    D_out = w2.shape[0]
    w1_bf = jnp.asarray(w1).T.astype(jnp.bfloat16)            # (D_in, H)
    b1_2d = jnp.asarray(b1, dtype=jnp.float32).reshape(1, H)
    w2_bf = jnp.asarray(w2).T.astype(jnp.bfloat16)            # (H, D_out)
    b2_2d = jnp.asarray(b2, dtype=jnp.float32).reshape(1, D_out)
    return w1_bf, b1_2d, w2_bf, b2_2d


def image_to_attribute(x, params):
    """x: (B, D_in) f32; params: output of prepare_params. Returns (B, D_out) f32."""
    w1_bf, b1_2d, w2_bf, b2_2d = params
    B, D_in = x.shape
    H = w1_bf.shape[1]
    D_out = w2_bf.shape[1]

    flops = 2 * B * (D_in * H + H * D_out)
    bytes_accessed = (
        B * D_in * 4            # x (f32 in)
        + D_in * H * 2          # w1 (bf16)
        + H * 4                 # b1 (f32)
        + H * D_out * 2         # w2 (bf16)
        + D_out * 4             # b2 (f32)
        + B * D_out * 4         # out (f32)
    )

    # Single-block problem: no grid, no pipeline overhead. Every operand lives
    # whole in VMEM (<20 KiB total, far under any generation's VMEM limit).
    return pl.pallas_call(
        _mlp_kernel,
        out_shape=jax.ShapeDtypeStruct((B, D_out), jnp.float32),
        in_specs=[
            pl.BlockSpec(memory_space=pltpu.MemorySpace.VMEM),  # x (f32)
            pl.BlockSpec(memory_space=pltpu.MemorySpace.VMEM),  # w1 (bf16)
            pl.BlockSpec(memory_space=pltpu.MemorySpace.VMEM),  # b1 (f32)
            pl.BlockSpec(memory_space=pltpu.MemorySpace.VMEM),  # w2 (bf16)
            pl.BlockSpec(memory_space=pltpu.MemorySpace.VMEM),  # b2 (f32)
        ],
        out_specs=pl.BlockSpec(memory_space=pltpu.MemorySpace.VMEM),
        cost_estimate=pl.CostEstimate(flops=flops,
                                      transcendentals=0,
                                      bytes_accessed=bytes_accessed),
    )(x, w1_bf, b1_2d, w2_bf, b2_2d)


def _ref_forward_f32(x, w1, b1, w2, b2):
    # Exact PyTorch-module math in f32 (PyTorch layout: (out, in) weights).
    h = jnp.maximum(x @ w1.T + b1, 0.0)
    return h @ w2.T + b2


def _ref_forward_bf16(x, w1, b1, w2, b2):
    # Mirrors the kernel's bf16-operand / f32-accumulate numerics.
    h = jnp.dot(x.astype(jnp.bfloat16), w1.T.astype(jnp.bfloat16),
                preferred_element_type=jnp.float32)
    h = jnp.maximum(h + b1, 0.0)
    y = jnp.dot(h.astype(jnp.bfloat16), w2.T.astype(jnp.bfloat16),
                preferred_element_type=jnp.float32)
    return y + b2


if __name__ == "__main__":
    # Small shapes consistent with the module: batch=8, input_size=32,
    # hidden=128 (fixed by the module), output_size=8.
    B, D_IN, H, D_OUT = 8, 32, 128, 8

    key = jax.random.PRNGKey(0)
    k_x, k_w1, k_b1, k_w2, k_b2 = jax.random.split(key, 5)

    x = jax.random.normal(k_x, (B, D_IN), dtype=jnp.float32)

    # Deterministic init mimicking nn.Linear default (uniform +- 1/sqrt(fan_in)),
    # stored in PyTorch layout (out_features, in_features).
    lim1 = 1.0 / jnp.sqrt(jnp.float32(D_IN))
    w1 = jax.random.uniform(k_w1, (H, D_IN), jnp.float32, -lim1, lim1)
    b1 = jax.random.uniform(k_b1, (H,), jnp.float32, -lim1, lim1)
    lim2 = 1.0 / jnp.sqrt(jnp.float32(H))
    w2 = jax.random.uniform(k_w2, (D_OUT, H), jnp.float32, -lim2, lim2)
    b2 = jax.random.uniform(k_b2, (D_OUT,), jnp.float32, -lim2, lim2)

    # One-time weight prep (hoisted out of the hot path).
    params = jax.tree.map(jax.block_until_ready, prepare_params(w1, b1, w2, b2))

    out = image_to_attribute(x, params)
    jax.block_until_ready(out)
    assert out.shape == (B, D_OUT)
    assert out.dtype == jnp.float32

    # Tight check against a reference with matching bf16-operand numerics.
    ref_bf16 = _ref_forward_bf16(x, w1, b1, w2, b2)
    assert jnp.allclose(out, ref_bf16, atol=1e-4, rtol=1e-4)

    # Loose check against the full-f32 PyTorch-equivalent reference
    # (bf16 operand rounding with f32 accumulation).
    ref_f32 = _ref_forward_f32(x, w1, b1, w2, b2)
    assert jnp.allclose(out, ref_f32, atol=3e-2, rtol=3e-2)

    print("KERNEL_OK")
</pallas_src>

<mosaic_0001>
module attributes {stable_mosaic.version = 11 : i64} {
  func.func @_mlp_kernel(%arg0: memref<8x32xf32, #tpu.memory_space<vmem>>, %arg1: memref<32x128xbf16, #tpu.memory_space<vmem>>, %arg2: memref<1x128xf32, #tpu.memory_space<vmem>>, %arg3: memref<128x8xbf16, #tpu.memory_space<vmem>>, %arg4: memref<1x8xf32, #tpu.memory_space<vmem>>, %arg5: memref<8x8xf32, #tpu.memory_space<vmem>>) attributes {dimension_semantics = [], scalar_prefetch = 0 : i64, scratch_operands = 0 : i64, tpu.core_type = #tpu.core_type<tc>} {
    %c0 = arith.constant 0 : index
    %c0_0 = arith.constant 0 : index
    %0 = vector.load %arg0[%c0, %c0_0] : memref<8x32xf32, #tpu.memory_space<vmem>>, vector<8x32xf32>
    %1 = arith.truncf %0 : vector<8x32xf32> to vector<8x32xbf16>
    %c0_1 = arith.constant 0 : index
    %c0_2 = arith.constant 0 : index
    %2 = vector.load %arg1[%c0_1, %c0_2] : memref<32x128xbf16, #tpu.memory_space<vmem>>, vector<32x128xbf16>
    %cst = arith.constant dense<0.000000e+00> : vector<8x128xf32>
    %3 = tpu.matmul %1, %2, %cst {dimension_numbers = #tpu.dot_dimension_numbers<[1], [0], [0], [1], [0, 0, 1, 1], [], []>} : vector<8x32xbf16>, vector<32x128xbf16>, vector<8x128xf32> -> vector<8x128xf32>
    %c0_3 = arith.constant 0 : index
    %c0_4 = arith.constant 0 : index
    %4 = vector.load %arg2[%c0_3, %c0_4] : memref<1x128xf32, #tpu.memory_space<vmem>>, vector<1x128xf32>
    %5 = vector.broadcast %4 : vector<1x128xf32> to vector<8x128xf32>
    %6 = arith.addf %3, %5 : vector<8x128xf32>
    %cst_5 = arith.constant 0.000000e+00 : f32
    %7 = vector.broadcast %cst_5 : f32 to vector<8x128xf32>
    %8 = arith.maximumf %6, %7 : vector<8x128xf32>
    %9 = arith.truncf %8 : vector<8x128xf32> to vector<8x128xbf16>
    %c0_6 = arith.constant 0 : index
    %c0_7 = arith.constant 0 : index
    %10 = vector.load %arg3[%c0_6, %c0_7] : memref<128x8xbf16, #tpu.memory_space<vmem>>, vector<128x8xbf16>
    %cst_8 = arith.constant dense<0.000000e+00> : vector<8x8xf32>
    %11 = tpu.matmul %9, %10, %cst_8 {dimension_numbers = #tpu.dot_dimension_numbers<[1], [0], [0], [1], [0, 0, 1, 1], [], []>} : vector<8x128xbf16>, vector<128x8xbf16>, vector<8x8xf32> -> vector<8x8xf32>
    %c0_9 = arith.constant 0 : index
    %c0_10 = arith.constant 0 : index
    %12 = vector.load %arg4[%c0_9, %c0_10] : memref<1x8xf32, #tpu.memory_space<vmem>>, vector<1x8xf32>
    %13 = vector.broadcast %12 : vector<1x8xf32> to vector<8x8xf32>
    %14 = arith.addf %11, %13 : vector<8x8xf32>
    %c0_11 = arith.constant 0 : index
    %c0_12 = arith.constant 0 : index
    %15 = vector.load %arg5[%c0_11, %c0_12] : memref<8x8xf32, #tpu.memory_space<vmem>>, vector<8x8xf32>
    tpu.vector_store %arg5[%c0_11, %c0_12], %14 {strides = array<i32>} : memref<8x8xf32, #tpu.memory_space<vmem>>, vector<8x8xf32>,
    return
  }
}

</mosaic_0001>

<bundles_post_ra>
// kernel: tpu_custom_call.1
= control target key start
LH: loop header
LB: loop body
LE: loop exit
PB: predicated region body
PF: predicated region fallthrough
CT: control target
= control target key end

     0   :  { %v310_v1 = vmov 0.0   ;;  %vm311_vm0 = vmmov 0   ;;  %vm47_vm1 = vcmask 261120   ;;  %s394_s0 = inlined_call_operand.vmem [shape: f32[8,32], index: 0, kind: input, shape index: {}]   ;;  %s395_s1 = inlined_call_operand.vmem [shape: bf16[32,128], index: 1, kind: input, shape index: {}]   ;;  %s396_s2 = inlined_call_operand.vmem [shape: f32[1,128], index: 2, kind: input, shape index: {}]   ;;  %s397_s3 = inlined_call_operand.vmem [shape: bf16[128,8], index: 3, kind: input, shape index: {}]   ;;  %s398_s4 = inlined_call_operand.vmem [shape: f32[1,8], index: 4, kind: input, shape index: {}]   ;;  %s399_s5 = inlined_call_operand.hbm [shape: f32[8,8], index: 5, kind: output, shape index: {}]  }
   0x1   :  { %v276_v0 = vld [vmem:[%s395_s1] sm:$0xff]   ;;  %245 = vmatprep.subr.bf16.mxu0 %v310_v1  ;;  %v277_v2 = vld [vmem:[%s395_s1 + $0x8] sm:$0xff]   ;;  %253 = vmatprep.subr.bf16.mxu1 %v310_v1  ;;  %v280_v7 = vld [vmem:[%s397_s3 + $0x10] sm:$0xff]  }
   0x2   :  { %246 = vmatpush3.bf16.msra.mxu0 %v276_v0  ;;  %249 = vmatprep.mubr.msk.bf16.mxu0 %vm311_vm0, %v310_v1  ;;  %v22_v3 = vld [vmem:[%s394_s0] sm:$0xff]  ;;  %v279_v6 = vld [vmem:[%s397_s3 + $0x8] sm:$0xff]  }
   0x3   :  { %247 = vmatprep.subr.bf16.mxu0 %v310_v1  ;;  %v278_v4 = vld [vmem:[%s397_s3] sm:$0xff]   ;;  %269 = vmatprep.mubr.msk.bf16.mxu1 %vm311_vm0, %v310_v1  ;;  %v23_v5 = vpack.c.bf16 %v22_v3, %v22_v3 }
   0x4   :  { %254 = vmatpush3.bf16.msra.mxu1 %v278_v4 }
   0x5   :  { %255 = vmatprep.subr.bf16.mxu1 %v310_v1 }
   0x6   :  { %248 = vmatpush3.bf16.msra.mxu0 %v277_v2 }
   0x8   :  { %256 = vmatpush3.bf16.msra.mxu1 %v279_v6 }
   0x9   :  { %250 = vmatmul.mubr.msk.bf16.vlgmr.msra.gmra.mrb[0].mxu0 %vm47_vm1, %v23_v5  ;;  %257 = vmatprep.subr.bf16.mxu1 %v310_v1 }
   0xa   :  { %10 = vsyncpa [#allocation3], 0  ;;  %v281_v8 = vld [vmem:[%s397_s3 + $0x18] sm:$0xff]   ;;  %v282_v9 = vld [vmem:[%s397_s3 + $0x20] sm:$0xff]   ;;  %s312_s17 = smov [#allocation2]   ;;  %vm204_vm2 = vcmask 64512  }
   0xb   :  { %v283_v10 = vld [vmem:[%s397_s3 + $0x28] sm:$0xff]   ;;  %v284_v11 = vld [vmem:[%s397_s3 + $0x30] sm:$0xff]   ;;  %v285_v12 = vld [vmem:[%s397_s3 + $0x38] sm:$0xff]   ;;  %s212_s18 = sshll.u32 %s312_s17, 4  ;;  %s213_s18 = int_to_ptr.vmem [resolvable:$true] %s212_s18 }
   0xc   :  { %258 = vmatpush3.bf16.msra.mxu1 %v280_v7  ;;  %v220_v13 = vld [vmem:[%s396_s2] ss:$0 sm:$0xff]  ;;  %s286_s2 = scalar_lea.vmem %s213_s18, 128  ;;  %p291_p1 = scmp.lt.s32.totalorder %s213_s18, %s213_s18 }
   0xd   :  { %259 = vmatprep.subr.bf16.mxu1 %v310_v1  ;;  %v224_v21 = vld [vmem:[%s398_s4] ss:$0 sm:$0xff]  ;;  %p287_p0 = scmp.ne.s32.totalorder %s213_s18, %s286_s2  ;;  %p292_p2 = scmp.lt.s32.totalorder %s286_s2, %s286_s2 }
   0xf   :  { %p293_p3 = por %p292_p2, %p291_p1 }
  0x10   :  { %260 = vmatpush3.bf16.msra.mxu1 %v281_v8 }
  0x11   :  { %261 = vmatprep.subr.bf16.mxu1 %v310_v1  ;;  %p294_p4 = pnand %p293_p3, %p287_p0 }
  0x14   :  { %262 = vmatpush3.bf16.msra.mxu1 %v282_v9 }
  0x15   :  { %263 = vmatprep.subr.bf16.mxu1 %v310_v1 }
  0x18   :  { %264 = vmatpush3.bf16.msra.mxu1 %v283_v10 }
  0x19   :  { %265 = vmatprep.subr.bf16.mxu1 %v310_v1 }
  0x1c   :  { %266 = vmatpush3.bf16.msra.mxu1 %v284_v11 }
  0x1d   :  { %267 = vmatprep.subr.bf16.mxu1 %v310_v1 }
  0x20   :  { %268 = vmatpush3.bf16.msra.mxu1 %v285_v12 }
  0xdc   :  { %v85_v14 = vpop.f32.mrb[0].mxu0 }
  0xdd   :  { %v86_v15 = vadd.f32 %v220_v13, %v85_v14  ;;  %v251_v16 = vpop.f32.mrb[1].mxu0 }
  0xde   :  { %v88_v17 = vpop.f32.mrb[2].mxu0 }
  0xdf   :  { %v91_v18 = vmax.f32 %v86_v15, 0.0  ;;  %v252_v19 = vpop.f32.mrb[3].mxu0 }
  0xe1   :  { %v92_v20 = vpack.c.bf16 %v91_v18, %v91_v18 }
  0xe3   :  { %270 = vmatmul.mubr.bf16.vlgmr.msra.gmra.mrb[0].mxu1 %v92_v20 }
 0x1b6   :  { %v198_v22 = vpop.f32.mrb[0].mxu1 }
 0x1b7   :  { %v199_v23 = vadd.f32 %v224_v21, %v198_v22  ;;  %v271_v24 = vpop.f32.mrb[1].mxu1 }
 0x1b8   :  { %v201_v25 = vpop.f32.mrb[2].mxu1 }
 0x1b9   :  { %v272_v26 = vpop.f32.mrb[3].mxu1  ;;  %205 = vst.msk [vmem:[#allocation2] sm:$0xff] %vm204_vm2, %v199_v23 }
 0x1ba   :  { %297 = shalt.err (!%p294_p4)
}
 0x1bb   :  { %s298_s4 = scalar_lea.hbm %s399_s5, 128 }
 0x1bc   :  { %p299_p5 = scmp.ne.s32.totalorder %s399_s5, %s298_s4  ;;  %p302_p6 = scmp.lt.u32.totalorder %s298_s4, %s399_s5 }
 0x1be   :  { %p304_p7 = pnand %p302_p6, %p299_p5 }
 0x1c0   :  { %307 = shalt.err (!%p304_p7)
}
 0x1c1   :  { %215 = dma.vmem_to_hbm [thread:$0]  %s213_s18, 128, %s399_s5, [#allocation3]  }
 0x1c2   :  { %308 = dma.done.wait [#allocation3], 128  }
 0x1c3   :  { %309 = vsyncadd [#allocation3], 4294967168 }
 0x1c4   :  { %219 = vsyncpa [#allocation3], 1 }

</bundles_post_ra>
